<compile_context>
chip_gen: v5e
topology: v5e:2x2
jax: 0.10.0
libtpu: 0.0.40
codegen_flags: <defaults>
</compile_context>

<pallas_src>
import math

import jax
import jax.numpy as jnp
import numpy as np
from jax.experimental import pallas as pl
from jax.experimental.pallas import tpu as pltpu

ALPHA = 20.0
# The kernel skips the softmax max-subtraction pass because |h| <= 1
# (tanh * sigmoid), so |ALPHA * h| <= ALPHA.  f32 exp() overflows near 88.
assert abs(ALPHA) < 80.0, "raise ALPHA only with the max-subtraction pass restored"


def _sequence_pro_kernel(x_ref, w_ref, out_ref, gates_ref):
    # x_ref:     (B, T_BLK*D)     lane-dense inputs for this timestep block
    # w_ref:     (T_BLK, D, 3*D)  fused [i | g | o] input->gate weights
    # out_ref:   (B, T_BLK*D)     lane-dense softmax(ALPHA * h) for the block
    # gates_ref: (T_BLK*B, 3*D)   VMEM scratch: per-timestep matmul results
    #                             packed into one sublane-dense slab
    t_blk, d, _ = w_ref.shape
    b = x_ref.shape[0]

    # --- per-timestep gate matmuls ------------------------------------------
    # Each timestep has its own weight matrix, so the MXU calls are inherently
    # per-timestep; results are packed into the scratch so everything below
    # runs once over the whole block.
    for k in range(t_blk):
        gates_ref[k * b:(k + 1) * b, :] = jnp.dot(
            x_ref[:, k * d:(k + 1) * d], w_ref[k],
            preferred_element_type=jnp.float32)
    gates = gates_ref[...]                                   # (T_BLK*B, 3D)

    # --- LSTMCell nonlinearities, batched over the block --------------------
    # One sigmoid pass covers both i and o gates; the forget gate was dropped
    # in the wrapper (it only multiplies c0 == 0) and W_hh @ h0 is identically
    # zero, so neither is computed.
    sig = jax.nn.sigmoid(gates)
    i_g = sig[:, 0 * d:1 * d]
    o_g = sig[:, 2 * d:3 * d]
    g_g = jnp.tanh(gates[:, 1 * d:2 * d])
    c = i_g * g_g                                            # f*c0 term == 0
    h = o_g * jnp.tanh(c)                                    # (T_BLK*B, D)

    # --- softmax(ALPHA * h) per (timestep, batch) row ------------------------
    # |ALPHA*h| <= ALPHA << 88, so exp() cannot overflow in f32 and the
    # max-subtraction pass is skipped (one less cross-lane reduce per row).
    e = jnp.exp(ALPHA * h)
    denom = jnp.sum(e, axis=-1, keepdims=True)               # (T_BLK*B, 1)
    r = pl.reciprocal(denom, approx=True)                    # EUP slot
    r = r * (2.0 - denom * r)                                # 1 NR step, ~1e-7 rel err
    probs = e * r                                            # (T_BLK*B, D)

    # --- stores ---------------------------------------------------------------
    # The out block is lane-dense (B, T_BLK*D) -> one fully packed output DMA
    # per grid step; the per-timestep stores below only touch VMEM.
    for k in range(t_blk):
        out_ref[:, k * d:(k + 1) * d] = probs[k * b:(k + 1) * b, :].astype(
            out_ref.dtype)


def _choose_t_blk(batch, seq, d, *, vmem_budget_bytes=12 << 20, max_t_blk=32):
    """Pick the timestep block size.

    Constraints / preferences:
      * t_blk divides S.
      * t_blk * D is a multiple of 128 (lane-dense in/out blocks), unless the
        whole sequence is one full-extent block.
      * Double-buffered f32 tiles (weights + x + out) fit a budget sized for
        v5e's 16 MiB default scoped VMEM (ample headroom on v6e/v7x);
        max_t_blk also bounds the in-kernel unroll length.
      * Prefer >= 2 grid steps so the 'parallel' time axis can be sharded
        across the two TensorCores of a v7x megacore.
    """
    bytes_per_t = 4 * (3 * d * d + 2 * batch * d)   # weight + x + out rows, f32
    cands = []
    for t in range(1, min(seq, max_t_blk) + 1):
        if seq % t != 0:
            continue
        if (t * d) % 128 != 0:
            continue
        if 2 * t * bytes_per_t > vmem_budget_bytes:     # double-buffered
            continue
        cands.append(t)
    if not cands:
        # TODO(synk): for very large S*D this single full-extent block could
        # exceed VMEM; a padded-S path would be needed there.
        return seq
    multi_step = [t for t in cands if seq // t >= 2]
    return max(multi_step) if multi_step else max(cands)


def sequence_pro(x, w_ih, *, t_blk=None):
    """SequencePro forward.

    x:    [B, S, D] float32
    w_ih: [S, 4*D, D] per-timestep LSTMCell weight_ih (PyTorch layout, rows
          [i; f; g; o]).  w_hh is intentionally not an argument: with
          h0 = c0 = 0 (rebuilt inside CellPro on every call) its contribution
          is exactly zero, so passing it would only add dead DMA / MXU work.
    Returns probs: [B, S, D] with probs[:, t] = softmax(ALPHA * h_t).
    """
    B, S, D = x.shape
    assert w_ih.shape == (S, 4 * D, D)

    if t_blk is None:
        t_blk = _choose_t_blk(B, S, D)
    assert S % t_blk == 0
    assert (t_blk * D) % 128 == 0 or t_blk == S

    # One-time weight fusion (wrapper-side XLA, outside the kernel):
    #   * drop the forget-gate rows (they only ever multiply c0 == 0),
    #   * transpose so a single x_t @ w[t] yields [i | g | o] lane-packed:
    #     [S, 4D, D] -> [S, D, 3D].
    # Weights stay f32: bf16 would halve the dominant HBM traffic but would
    # break the 1e-5 accuracy check below.
    w_igo = jnp.concatenate(
        [w_ih[:, 0 * D:1 * D, :],          # input gate rows
         w_ih[:, 2 * D:3 * D, :],          # cell (g) gate rows
         w_ih[:, 3 * D:4 * D, :]],         # output gate rows
        axis=1)                            # (S, 3D, D)
    w_fused = jnp.transpose(w_igo, (0, 2, 1)).astype(jnp.float32)   # (S, D, 3D)

    # Lane-dense 2-D view of the activations (trailing dims are contiguous,
    # so this reshape is free); the PyTorch [B, S, D] layout is preserved.
    x2d = x.reshape(B, S * D).astype(jnp.float32)

    out2d = pl.pallas_call(
        _sequence_pro_kernel,
        out_shape=jax.ShapeDtypeStruct((B, S * D), jnp.float32),
        grid_spec=pltpu.PrefetchScalarGridSpec(
            num_scalar_prefetch=0,
            grid=(S // t_blk,),
            in_specs=[
                pl.BlockSpec((B, t_blk * D), lambda t: (0, t)),
                pl.BlockSpec((t_blk, D, 3 * D), lambda t: (t, 0, 0)),
            ],
            out_specs=pl.BlockSpec((B, t_blk * D), lambda t: (0, t)),
            scratch_shapes=[pltpu.VMEM((t_blk * B, 3 * D), jnp.float32)],
        ),
        # No state is carried across timesteps (h0 = c0 = 0 every step), so
        # the time axis is truly parallel (sharded across the 2 TensorCores
        # of a v7x megacore whenever the grid has >= 2 steps).
        compiler_params=pltpu.CompilerParams(
            dimension_semantics=("parallel",),
            vmem_limit_bytes=32 * 1024 * 1024),
    )(x2d, w_fused)
    return out2d.reshape(B, S, D)


def _reference(x, w_ih, w_hh):
    """Pure-JAX reference matching the PyTorch forward (LSTMCell, h0=c0=0)."""
    B, S, D = x.shape
    h0 = jnp.zeros((B, D), jnp.float32)
    c0 = jnp.zeros((B, D), jnp.float32)
    outs = []
    for t in range(S):
        gates = x[:, t, :] @ w_ih[t].T + h0 @ w_hh[t].T
        i = jax.nn.sigmoid(gates[:, 0 * D:1 * D])
        f = jax.nn.sigmoid(gates[:, 1 * D:2 * D])
        g = jnp.tanh(gates[:, 2 * D:3 * D])
        o = jax.nn.sigmoid(gates[:, 3 * D:4 * D])
        c = f * c0 + i * g
        h = o * jnp.tanh(c)
        outs.append(jax.nn.softmax(ALPHA * h, axis=-1))
    return jnp.stack(outs, axis=1)


if __name__ == "__main__":
    B, S, D = 2, 8, 32
    key = jax.random.PRNGKey(0)
    kx, kih, khh = jax.random.split(key, 3)

    x = jax.random.normal(kx, (B, S, D), dtype=jnp.float32)

    # CellPro re-initializes its weights on every per-timestep call; model
    # that as one deterministic weight set per timestep: uniform(-stdv, stdv)
    # plus the tiled identity, exactly as the PyTorch module builds them.
    stdv = 1.0 / math.sqrt(1024)
    eye4 = jnp.tile(jnp.eye(D, dtype=jnp.float32), (4, 1))          # (4D, D)
    w_ih = jax.random.uniform(kih, (S, 4 * D, D), jnp.float32,
                              minval=-stdv, maxval=stdv) + eye4[None]
    # w_hh only ever multiplies the all-zero initial hidden state; it is
    # generated here purely so the reference demonstrates that omitting it
    # from the kernel is exact.
    w_hh = jax.random.uniform(khh, (S, 4 * D, D), jnp.float32,
                              minval=-stdv, maxval=stdv) + eye4[None]

    probs = jax.block_until_ready(sequence_pro(x, w_ih))
    ref = jax.block_until_ready(_reference(x, w_ih, w_hh))

    assert probs.shape == (B, S, D)
    np.testing.assert_allclose(np.asarray(probs), np.asarray(ref),
                               rtol=1e-5, atol=1e-5)
    print("KERNEL_OK")
</pallas_src>

<mosaic_0001>
module attributes {stable_mosaic.version = 11 : i64} {
  func.func @_sequence_pro_kernel(%arg0: i32, %arg1: memref<2x128xf32, #tpu.memory_space<vmem>>, %arg2: memref<4x32x96xf32, #tpu.memory_space<vmem>>, %arg3: memref<2x128xf32, #tpu.memory_space<vmem>>, %arg4: memref<8x96xf32, #tpu.memory_space<vmem>>) attributes {dimension_semantics = [#tpu.dimension_semantics<parallel>], iteration_bounds = array<i64: 2>, scalar_prefetch = 0 : i64, scratch_operands = 1 : i64, tpu.core_type = #tpu.core_type<tc>, window_params = [{transform_indices = @transform_0, window_bounds = array<i64: 2, 128>}, {transform_indices = @transform_1, window_bounds = array<i64: 4, 32, 96>}, {transform_indices = @transform_2, window_bounds = array<i64: 2, 128>}]} {
    %c0 = arith.constant 0 : index
    %c0_0 = arith.constant 0 : index
    %0 = vector.load %arg1[%c0, %c0_0] : memref<2x128xf32, #tpu.memory_space<vmem>>, vector<2x32xf32>
    %c0_1 = arith.constant 0 : index
    %c0_2 = arith.constant 0 : index
    %c0_3 = arith.constant 0 : index
    %1 = vector.load %arg2[%c0_1, %c0_2, %c0_3] : memref<4x32x96xf32, #tpu.memory_space<vmem>>, vector<1x32x96xf32>
    %2 = vector.shape_cast %1 : vector<1x32x96xf32> to vector<32x96xf32>
    %cst = arith.constant dense<0.000000e+00> : vector<2x96xf32>
    %3 = tpu.matmul %0, %2, %cst {dimension_numbers = #tpu.dot_dimension_numbers<[1], [0], [0], [1], [0, 0, 1, 1], [], []>} : vector<2x32xf32>, vector<32x96xf32>, vector<2x96xf32> -> vector<2x96xf32>
    %c0_4 = arith.constant 0 : index
    %c0_5 = arith.constant 0 : index
    %4 = vector.load %arg4[%c0_4, %c0_5] : memref<8x96xf32, #tpu.memory_space<vmem>>, vector<2x96xf32>
    tpu.vector_store %arg4[%c0_4, %c0_5], %3 {strides = array<i32>} : memref<8x96xf32, #tpu.memory_space<vmem>>, vector<2x96xf32>,
    %c0_6 = arith.constant 0 : index
    %c32 = arith.constant 32 : index
    %5 = vector.load %arg1[%c0_6, %c32] : memref<2x128xf32, #tpu.memory_space<vmem>>, vector<2x32xf32>
    %c1 = arith.constant 1 : index
    %c0_7 = arith.constant 0 : index
    %c0_8 = arith.constant 0 : index
    %6 = vector.load %arg2[%c1, %c0_7, %c0_8] : memref<4x32x96xf32, #tpu.memory_space<vmem>>, vector<1x32x96xf32>
    %7 = vector.shape_cast %6 : vector<1x32x96xf32> to vector<32x96xf32>
    %cst_9 = arith.constant dense<0.000000e+00> : vector<2x96xf32>
    %8 = tpu.matmul %5, %7, %cst_9 {dimension_numbers = #tpu.dot_dimension_numbers<[1], [0], [0], [1], [0, 0, 1, 1], [], []>} : vector<2x32xf32>, vector<32x96xf32>, vector<2x96xf32> -> vector<2x96xf32>
    %c2 = arith.constant 2 : index
    %c0_10 = arith.constant 0 : index
    %9 = vector.load %arg4[%c2, %c0_10] : memref<8x96xf32, #tpu.memory_space<vmem>>, vector<2x96xf32>
    tpu.vector_store %arg4[%c2, %c0_10], %8 {strides = array<i32>} : memref<8x96xf32, #tpu.memory_space<vmem>>, vector<2x96xf32>,
    %c0_11 = arith.constant 0 : index
    %c64 = arith.constant 64 : index
    %10 = vector.load %arg1[%c0_11, %c64] : memref<2x128xf32, #tpu.memory_space<vmem>>, vector<2x32xf32>
    %c2_12 = arith.constant 2 : index
    %c0_13 = arith.constant 0 : index
    %c0_14 = arith.constant 0 : index
    %11 = vector.load %arg2[%c2_12, %c0_13, %c0_14] : memref<4x32x96xf32, #tpu.memory_space<vmem>>, vector<1x32x96xf32>
    %12 = vector.shape_cast %11 : vector<1x32x96xf32> to vector<32x96xf32>
    %cst_15 = arith.constant dense<0.000000e+00> : vector<2x96xf32>
    %13 = tpu.matmul %10, %12, %cst_15 {dimension_numbers = #tpu.dot_dimension_numbers<[1], [0], [0], [1], [0, 0, 1, 1], [], []>} : vector<2x32xf32>, vector<32x96xf32>, vector<2x96xf32> -> vector<2x96xf32>
    %c4 = arith.constant 4 : index
    %c0_16 = arith.constant 0 : index
    %14 = vector.load %arg4[%c4, %c0_16] : memref<8x96xf32, #tpu.memory_space<vmem>>, vector<2x96xf32>
    tpu.vector_store %arg4[%c4, %c0_16], %13 {strides = array<i32>} : memref<8x96xf32, #tpu.memory_space<vmem>>, vector<2x96xf32>,
    %c0_17 = arith.constant 0 : index
    %c96 = arith.constant 96 : index
    %15 = vector.load %arg1[%c0_17, %c96] : memref<2x128xf32, #tpu.memory_space<vmem>>, vector<2x32xf32>
    %c3 = arith.constant 3 : index
    %c0_18 = arith.constant 0 : index
    %c0_19 = arith.constant 0 : index
    %16 = vector.load %arg2[%c3, %c0_18, %c0_19] : memref<4x32x96xf32, #tpu.memory_space<vmem>>, vector<1x32x96xf32>
    %17 = vector.shape_cast %16 : vector<1x32x96xf32> to vector<32x96xf32>
    %cst_20 = arith.constant dense<0.000000e+00> : vector<2x96xf32>
    %18 = tpu.matmul %15, %17, %cst_20 {dimension_numbers = #tpu.dot_dimension_numbers<[1], [0], [0], [1], [0, 0, 1, 1], [], []>} : vector<2x32xf32>, vector<32x96xf32>, vector<2x96xf32> -> vector<2x96xf32>
    %c6 = arith.constant 6 : index
    %c0_21 = arith.constant 0 : index
    %19 = vector.load %arg4[%c6, %c0_21] : memref<8x96xf32, #tpu.memory_space<vmem>>, vector<2x96xf32>
    tpu.vector_store %arg4[%c6, %c0_21], %18 {strides = array<i32>} : memref<8x96xf32, #tpu.memory_space<vmem>>, vector<2x96xf32>,
    %c0_22 = arith.constant 0 : index
    %c0_23 = arith.constant 0 : index
    %20 = vector.load %arg4[%c0_22, %c0_23] : memref<8x96xf32, #tpu.memory_space<vmem>>, vector<8x96xf32>
    %21 = arith.negf %20 : vector<8x96xf32>
    %22 = math.exp %21 : vector<8x96xf32>
    %cst_24 = arith.constant 1.000000e+00 : f32
    %23 = vector.broadcast %cst_24 : f32 to vector<8x96xf32>
    %24 = arith.addf %23, %22 : vector<8x96xf32>
    %25 = arith.divf %23, %24 : vector<8x96xf32>
    %26 = vector.extract_strided_slice %25 {offsets = [0, 0], sizes = [8, 32], strides = [1, 1]} : vector<8x96xf32> to vector<8x32xf32>
    %27 = vector.extract_strided_slice %25 {offsets = [0, 64], sizes = [8, 32], strides = [1, 1]} : vector<8x96xf32> to vector<8x32xf32>
    %28 = vector.extract_strided_slice %20 {offsets = [0, 32], sizes = [8, 32], strides = [1, 1]} : vector<8x96xf32> to vector<8x32xf32>
    %29 = math.tanh %28 : vector<8x32xf32>
    %30 = arith.mulf %26, %29 : vector<8x32xf32>
    %31 = math.tanh %30 : vector<8x32xf32>
    %32 = arith.mulf %27, %31 : vector<8x32xf32>
    %cst_25 = arith.constant 2.000000e+01 : f32
    %33 = vector.broadcast %cst_25 : f32 to vector<8x32xf32>
    %34 = arith.mulf %33, %32 : vector<8x32xf32>
    %35 = math.exp %34 : vector<8x32xf32>
    %cst_26 = arith.constant dense<0.000000e+00> : vector<8xf32>
    %36 = vector.multi_reduction <add>, %35, %cst_26 [1] : vector<8x32xf32> to vector<8xf32>
    %37 = vector.shape_cast %36 : vector<8xf32> to vector<8x1xf32>
    %38 = tpu.reciprocal %37 {approx = true} : vector<8x1xf32> -> vector<8x1xf32>
    %39 = arith.mulf %37, %38 : vector<8x1xf32>
    %cst_27 = arith.constant 2.000000e+00 : f32
    %40 = vector.broadcast %cst_27 : f32 to vector<8x1xf32>
    %41 = arith.subf %40, %39 : vector<8x1xf32>
    %42 = arith.mulf %38, %41 : vector<8x1xf32>
    %43 = vector.broadcast %42 : vector<8x1xf32> to vector<8x32xf32>
    %44 = arith.mulf %35, %43 : vector<8x32xf32>
    %45 = vector.extract_strided_slice %44 {offsets = [0, 0], sizes = [2, 32], strides = [1, 1]} : vector<8x32xf32> to vector<2x32xf32>
    %c0_28 = arith.constant 0 : index
    %c0_29 = arith.constant 0 : index
    %46 = vector.load %arg3[%c0_28, %c0_29] : memref<2x128xf32, #tpu.memory_space<vmem>>, vector<2x32xf32>
    tpu.vector_store %arg3[%c0_28, %c0_29], %45 {strides = array<i32>} : memref<2x128xf32, #tpu.memory_space<vmem>>, vector<2x32xf32>,
    %47 = vector.extract_strided_slice %44 {offsets = [2, 0], sizes = [2, 32], strides = [1, 1]} : vector<8x32xf32> to vector<2x32xf32>
    %c0_30 = arith.constant 0 : index
    %c32_31 = arith.constant 32 : index
    %48 = vector.load %arg3[%c0_30, %c32_31] : memref<2x128xf32, #tpu.memory_space<vmem>>, vector<2x32xf32>
    tpu.vector_store %arg3[%c0_30, %c32_31], %47 {strides = array<i32>} : memref<2x128xf32, #tpu.memory_space<vmem>>, vector<2x32xf32>,
    %49 = vector.extract_strided_slice %44 {offsets = [4, 0], sizes = [2, 32], strides = [1, 1]} : vector<8x32xf32> to vector<2x32xf32>
    %c0_32 = arith.constant 0 : index
    %c64_33 = arith.constant 64 : index
    %50 = vector.load %arg3[%c0_32, %c64_33] : memref<2x128xf32, #tpu.memory_space<vmem>>, vector<2x32xf32>
    tpu.vector_store %arg3[%c0_32, %c64_33], %49 {strides = array<i32>} : memref<2x128xf32, #tpu.memory_space<vmem>>, vector<2x32xf32>,
    %51 = vector.extract_strided_slice %44 {offsets = [6, 0], sizes = [2, 32], strides = [1, 1]} : vector<8x32xf32> to vector<2x32xf32>
    %c0_34 = arith.constant 0 : index
    %c96_35 = arith.constant 96 : index
    %52 = vector.load %arg3[%c0_34, %c96_35] : memref<2x128xf32, #tpu.memory_space<vmem>>, vector<2x32xf32>
    tpu.vector_store %arg3[%c0_34, %c96_35], %51 {strides = array<i32>} : memref<2x128xf32, #tpu.memory_space<vmem>>, vector<2x32xf32>,
    return
  }
  func.func @transform_0(%arg0: i32) -> (i32, i32) {
    %c0_i32 = arith.constant 0 : i32
    %c0_i32_0 = arith.constant 0 : i32
    return %c0_i32, %arg0 : i32, i32
  }
  func.func @transform_1(%arg0: i32) -> (i32, i32, i32) {
    %c0_i32 = arith.constant 0 : i32
    %c0_i32_0 = arith.constant 0 : i32
    %c0_i32_1 = arith.constant 0 : i32
    return %arg0, %c0_i32, %c0_i32_0 : i32, i32, i32
  }
  func.func @transform_2(%arg0: i32) -> (i32, i32) {
    %c0_i32 = arith.constant 0 : i32
    %c0_i32_0 = arith.constant 0 : i32
    return %c0_i32, %arg0 : i32, i32
  }
}

</mosaic_0001>

<bundles_post_ra>
// kernel: tpu_custom_call.1
= control target key start
LH: loop header
LB: loop body
LE: loop exit
PB: predicated region body
PF: predicated region fallthrough
CT: control target
= control target key end

     0   :  { %7 = vsyncpa [#allocation4], 0  ;;  %s967_s0 = inlined_call_operand.hbm [shape: f32[2,256], index: 0, kind: input, shape index: {}]   ;;  %s968_s1 = inlined_call_operand.hbm [shape: f32[8,32,96], index: 1, kind: input, shape index: {}]   ;;  %s969_s2 = inlined_call_operand.hbm [shape: f32[2,256], index: 2, kind: output, shape index: {}]  }
   0x1   :  { %9 = vsyncpa [#allocation4 + $0x1], 0 }
   0x2   :  { %10 = vsyncpa [#allocation7], 0 }
   0x3   :  { %12 = vsyncpa [#allocation7 + $0x1], 0 }
   0x4   :  { %13 = vsyncpa [#allocation5], 0 }
   0x5   :  { %15 = vsyncpa [#allocation5 + $0x1], 0  ;;  %s762_s9 = smov 0   ;;  %s764_s10 = smov 0  }
   0x6   :  { %s766_s11 = smov 0   ;;  %s768_s12 = smov 0  }
   0x7 LB: > { %s783_s13 = sadd.s32 4294967295, %s740_s12   ;;  %s506_s14 = sadd.s32 4294967294, %s740_s12   ;;  %s740_s12 = sphi %s768_s12, %s980_s12   ;;  %s736_s11 = sphi %s766_s11, %s979_s11   ;;  %s732_s10 = sphi %s764_s10, %s978_s10   ;;  %s728_s9 = sphi %s762_s9, %s977_s9  }
   0x8   : > { %s787_s15 = sadd.s32 1, %s740_s12   ;;  %s28_s16 = sadd.s32 1, %s736_s11 }
   0x9   : > { %s25_s17 = ssub.s32 %s740_s12, %s787_s15  ;;  %p35_p0 = scmp.ne.s32.totalorder %s736_s11, %s732_s10 }
   0xa   : > { %p26_p1 = scmp.eq.s32.totalorder %s25_s17, 0  ;;  %p36_p2 = scmp.eq.s32.totalorder %s740_s12, 0 }
   0xb   : > { %p41_p3 = scmp.ne.s32.totalorder %s732_s10, %s728_s9  ;;  %p42_p4 = scmp.eq.s32.totalorder %s783_s13, 0 }
   0xc   : > { %s799_s18 = scalar_select %p26_p1, %s736_s11, %s28_s16  }
   0xd   : > { %p801_p5 = por %p36_p2, %p35_p0  ;;  %p805_p6 = por %p42_p4, %p41_p3 }
   0xe   : > { %p91_p7 = scmp.eq.s32.totalorder %s783_s13, 1  ;;  %p97_p8 = scmp.eq.s32.totalorder %s506_s14, 1 }
   0xf   : > { %p559_p10 = scmp.lt.s32.totalorder %s740_s12, 2  ;;  %s821_s23 = sand.u32 1, %s736_s11  }
  0x10   : > { %p812_p11 = por %p91_p7, %p35_p0  ;;  %p816_p12 = por %p97_p8, %p41_p3 }
  0x11   : > { %s510_s24 = sshll.u32 %s740_s12, 1  ;;  %s509_s25 = sshll.u32 %s821_s23, 1 }
  0x12   : > { %s125_s28 = scalar_lea.hbm %s967_s0, %s510_s24  ;;  %s121_s30 = scalar_lea.vmem [#allocation3], %s509_s25 }
  0x13   : > { %s127_s29 = sshll.u32 %s125_s28, 4  ;;  %s129_s3 = sshll.u32 %s121_s30, 4  ;;  %s128_s29 = int_to_ptr.hbm [resolvable:$true] %s127_s29  ;;  %s130_s3 = int_to_ptr.vmem [resolvable:$true] %s129_s3 }
  0x14   : > { %p830_p13 = pnand %p559_p10, %p801_p5  ;;  %p515_p0 = scmp.ge.s32.totalorder %s740_s12, 1 }
  0x15   : > { %p157_p1 = scmp.lt.s32.totalorder %s740_s12, 3  ;;  %s511_s5 = sshll.u32 %s821_s23, 7 }
  0x16   : > { %s118_s6 = scalar_lea.sflag [#allocation4], %s821_s23  ;;  %s610_s7 = sshra.s32 %s128_s29, 4  ;;  %s611_s7 = int_to_ptr.hbm [resolvable:$true] %s610_s7 }
  0x17   : > { %s612_s8 = scalar_lea.hbm %s611_s7, 2  ;;  %p614_p3 = pneg %p830_p13 }
  0x18   : > { %p613_p2 = scmp.ne.s32.totalorder %s611_s7, %s612_s8  ;;  %s617_s17 = scalar_lea.hbm %s967_s0, 4 }
  0x19   : > { %p618_p5 = scmp.lt.s32.totalorder %s611_s7, %s967_s0  ;;  %p619_p8 = scmp.lt.s32.totalorder %s617_s17, %s612_s8 }
  0x1a   : > { %p615_p4 = pnand %p614_p3, %p613_p2 }
  0x1b   : > { %p620_p10 = por %p619_p8, %p618_p5 }
  0x1c   : > { %p616_p7 = pneg %p615_p4 }
  0x1e   : > { %p621_p9 = pnand %p620_p10, %p616_p7 }
  0x20   : > { %624 = shalt.err (!%p621_p9)
}
  0x21   : > { %551 = dma.hbm_to_vmem [thread:$0]  (!%p830_p13), %s128_s29, 32, %s130_s3, %s118_s6  }
  0x22   : > { %p855_p2 = pnand %p515_p0, %p157_p1  ;;  %s541_s26 = sshll.u32 %s740_s12, 7 }
  0x23   : > { %s140_s27 = scalar_lea.vmem [#allocation6], %s511_s5  ;;  %s146_s8 = scalar_lea.hbm %s968_s1, %s541_s26 }
  0x24   : > { %s149_s28 = sshll.u32 %s140_s27, 4  ;;  %s147_s14 = sshll.u32 %s146_s8, 4  ;;  %s150_s28 = int_to_ptr.vmem [resolvable:$true] %s149_s28  ;;  %s148_s14 = int_to_ptr.hbm [resolvable:$true] %s147_s14 }
  0x25   : > { %s137_s16 = scalar_lea.sflag [#allocation7], %s821_s23  ;;  %s640_s17 = sshra.s32 %s148_s14, 4  ;;  %s641_s17 = int_to_ptr.hbm [resolvable:$true] %s640_s17 }
  0x26   : > { %s642_s29 = scalar_lea.hbm %s641_s17, 128  ;;  %s647_s5 = scalar_lea.hbm %s968_s1, 256 }
  0x27   : > { %p643_p9 = scmp.ne.s32.totalorder %s641_s17, %s642_s29  ;;  %p648_p4 = scmp.lt.s32.totalorder %s641_s17, %s968_s1 }
  0x28   : > { %p649_p7 = scmp.lt.s32.totalorder %s647_s5, %s642_s29 }
  0x29   : > { %p645_p0 = pnand %p643_p9, %p614_p3 }
  0x2a   : > { %p650_p5 = por %p649_p7, %p648_p4 }
  0x2b   : > { %p646_p1 = pneg %p645_p0 }
  0x2d   : > { %p651_p8 = pnand %p650_p5, %p646_p1 }
  0x2f   : > { %654 = shalt.err (!%p651_p8)
}
  0x30   : > { %s742_s23 = smov 128   ;;  %s743_s26 = smov 8  }
  0x31   : > { %554 = dma.hbm_to_vmem [thread:$0]  (!%p830_p13), %s148_s14, 2048, %s150_s28, %s137_s16, %s742_s23, %s742_s23, %s743_s26  }
  0x32   : > { %161 = sbr.rel (%p855_p2) target bundleno = 907 (0x38b), region = 28  ;;  %s878_s27 = sand.u32 (!%p855_p2), 1, %s732_s10  }
  0x33   : > { %s516_s30 = sshll.u32 (!%p855_p2), %s878_s27, 1  ;;  %s164_s7 = scalar_lea.sflag (!%p855_p2), [#allocation4], %s878_s27 }
  0x34   : > { %s884_s8 = scalar_lea.vmem (!%p855_p2), [#allocation3], %s516_s30 }
  0x37   : > { %715 = dma.done.wait (%p805_p6), %s164_s7, 32  }
  0x38   : > { %717 = vsyncadd (%p805_p6), %s164_s7, 4294967264  ;;  %s517_s4 = sshll.u32 %s878_s27, 7  ;;  %s174_s25 = scalar_lea.sflag [#allocation7], %s878_s27 }
  0x39   : > { %s892_s28 = scalar_lea.vmem [#allocation6], %s517_s4 }
  0x3a   : > { %719 = dma.done.wait (%p805_p6), %s174_s25, 2048  }
  0x3b   : > { %721 = vsyncadd (%p805_p6), %s174_s25, 4294965248  ;;  %v268_v0 = vld [vmem:[%s884_s8] sm:$0x3]  ;;  %s744_s14 = smov 64   ;;  %s745_s16 = smov 96   ;;  %v527_v3 = vld [vmem:[%s892_s28 + $0x50] sm:$0xff] }
  0x3c   : > { %v236_v1 = vld [vmem:[%s884_s8] sm:$0x3]  ;;  %275 = vrot.lane.b32.xlu0 %v268_v0, %s744_s14  ;;  %v526_v4 = vld [vmem:[%s892_s28 + $0x48] sm:$0xff]  ;;  %v525_v5 = vld [vmem:[%s892_s28 + $0x40] sm:$0xff]  ;;  %s746_s20 = smov 32   ;;  %vm210_vm0 = vcmask 261120  }
  0x3d   : > { %243 = vrot.lane.b32.xlu1 %v236_v1, %s745_s16  ;;  %v528_v2 = vld [vmem:[%s892_s28 + $0x58] sm:$0xff]  ;;  %v532_v8 = vld [vmem:[%s892_s28 + $0x70] sm:$0xff]  ;;  %v531_v9 = vld [vmem:[%s892_s28 + $0x68] sm:$0xff]  ;;  %vm234_vm1 = vcmask 779264   ;;  %vm383_vm6 = vcmask 254976   ;;  %s537_s17 = sshll.u32 %s783_s13, 1 }
  0x3e   : > { %291 = vmatpush.msra.mxu2 %v528_v2  ;;  %v300_v6 = vld [vmem:[%s884_s8] sm:$0x3]  ;;  %v530_v10 = vld [vmem:[%s892_s28 + $0x60] sm:$0xff]  ;;  %v208_v13 = vld [vmem:[%s892_s28 + $0x10] sm:$0xff]  ;;  %vm388_vm7 = vcmask 519426   ;;  %vm390_vm8 = vcmask 783876   ;;  %s408_s5 = scalar_lea.hbm %s969_s2, %s537_s17 }
  0x3f   : > { %v533_v7 = vld [vmem:[%s892_s28 + $0x78] sm:$0xff]  ;;  %v522_v14 = vld [vmem:[%s892_s28 + $0x30] sm:$0xff]  ;;  %v207_v15 = vld [vmem:[%s892_s28 + $0x8] sm:$0xff]  ;;  %s203_s29 = scalar_lea.vmem [#allocation8], %s516_s30  ;;  %s412_s24 = sshll.u32 %s408_s5, 4  ;;  %vm395_vm9 = vcmask 1048326   ;;  %s413_s24 = int_to_ptr.hbm [resolvable:$true] %s412_s24 }
  0x40   : > { %292 = vmatpush.msra.mxu2 %v527_v3  ;;  %323 = vmatpush.msra.mxu3 %v533_v7  ;;  %v209_v11 = vld [vmem:[%s892_s28 + $0x18] sm:$0xff]  ;;  %v521_v16 = vld [vmem:[%s892_s28 + $0x28] sm:$0xff]  ;;  %v206_v17 = vld [vmem:[%s892_s28] sm:$0xff]  ;;  %s410_s19 = sshll.u32 %s203_s29, 4  ;;  %s398_s13 = scalar_lea.sflag [#allocation5], %s878_s27  ;;  %s411_s19 = int_to_ptr.vmem [resolvable:$true] %s410_s19 }
  0x41   : > { %v523_v12 = vld [vmem:[%s892_s28 + $0x38] sm:$0xff]  ;;  %226 = vmatpush.msra.mxu0 %v209_v11  ;;  %v520_v18 = vld [vmem:[%s892_s28 + $0x20] sm:$0xff]  ;;  %s684_s23 = sshra.s32 %s413_s24, 4  ;;  %s685_s23 = int_to_ptr.hbm [resolvable:$true] %s684_s23 }
  0x42   : > { %293 = vmatpush.msra.mxu2 %v526_v4  ;;  %324 = vmatpush.msra.mxu3 %v532_v8  ;;  %v205_v19 = vld [vmem:[%s884_s8] sm:$0x3]  ;;  %s686_s26 = scalar_lea.hbm %s685_s23, 2  ;;  %s690_s8 = scalar_lea.hbm %s969_s2, 4 }
  0x43   : > { %259 = vmatpush.msra.mxu1 %v523_v12  ;;  %227 = vmatpush.msra.mxu0 %v208_v13  ;;  %p687_p6 = scmp.ne.s32.totalorder %s685_s23, %s686_s26  ;;  %p691_p10 = scmp.lt.s32.totalorder %s685_s23, %s969_s2 }
  0x44   : > { %294 = vmatpush.msra.mxu2 %v525_v5  ;;  %307 = vrot.lane.b32.xlu0 %v300_v6, %s746_s20  ;;  %p692_p2 = scmp.lt.s32.totalorder %s690_s8, %s686_s26 }
  0x45   : > { %325 = vmatpush.msra.mxu3 %v531_v9  ;;  %260 = vmatpush.msra.mxu1 %v522_v14  ;;  %p688_p13 = pnand %p687_p6, %p812_p11 }
  0x46   : > { %228 = vmatpush.msra.mxu0 %v207_v15  ;;  %p693_p9 = por %p692_p2, %p691_p10 }
  0x47   : > { %326 = vmatpush.msra.mxu3 %v530_v10  ;;  %261 = vmatpush.msra.mxu1 %v521_v16  ;;  %p689_p3 = pneg %p688_p13 }
  0x48   : > { %229 = vmatpush.msra.mxu0 %v206_v17 }
  0x49   : > { %262 = vmatpush.msra.mxu1 %v520_v18  ;;  %519 = vmatmul.msk.f32.vlgmr.msra.gmra.mxu0 %vm210_vm0, %v205_v19  ;;  %p694_p0 = pnand %p693_p9, %p689_p3 }
  0xae   : > { %v276_v20 = vpop.permute.xlu0 %275 }
  0xaf   : > { %v244_v21 = vpop.permute.xlu1 %243  ;;  %529 = vmatmul.msk.f32.vlgmr.msra.gmra.mxu2 %vm210_vm0, %v276_v20 }
  0xb0   : > { %524 = vmatmul.msk.f32.vlgmr.msra.gmra.mxu1 %vm210_vm0, %v244_v21 }
  0xb6   : > { %v308_v22 = vpop.permute.xlu0 %307 }
  0xb7   : > { %534 = vmatmul.msk.f32.vlgmr.msra.gmra.mxu3 %vm210_vm0, %v308_v22 }
  0xc6   : > { %v231_v23 = vpop.f32.mrf.mxu0 }
  0xc7   : > { %235 = vst.msk [vmem:[#allocation2] sm:$0x3] %vm234_vm1, %v231_v23 }
 0x12d   : > { %v264_v24 = vpop.f32.mrf.mxu1 }
 0x12e   : > { %267 = vst.msk [vmem:[#allocation2 + $0x2] sm:$0x3] %vm234_vm1, %v264_v24 }
 0x132   : > { %v296_v25 = vpop.f32.mrf.mxu2 }
 0x133   : > { %299 = vst.msk [vmem:[#allocation2 + $0x4] sm:$0x3] %vm234_vm1, %v296_v25 }
 0x13a   : > { %v328_v26 = vpop.f32.mrf.mxu3 }
 0x13b   : > { %331 = vst.msk [vmem:[#allocation2 + $0x6] sm:$0x3] %vm234_vm1, %v328_v26 }
 0x142   : > { %v332_v27 = vld [vmem:[#allocation2] sm:$0xff] }
 0x143   : > { %598 = vtanh.f32 %v332_v27  ;;  %v535_v29 = vmul.f32 -1.442695, %v332_v27 }
 0x145   : > { %600 = vpow2.f32 %v535_v29 }
 0x149   : > { %v599_v28 = vpop.eup %598 }
 0x14a   : > { %354 = vrot.lane.b32.xlu1 %v599_v28, %s745_s16 }
 0x14b   : > { %v601_v30 = vpop.eup %600 }
 0x14c   : > { %v336_v31 = vadd.f32 1.0, %v601_v30 }
 0x14e   : > { %602 = vrcp.f32 %v336_v31  ;;  %v348_v37 = vand.u32 2147483648, %v336_v31  ;;  %vm342_vm3 = vweird.f32 %v336_v31  ;;  %v346_v38 = vand.u32 2147483647, %v336_v31 }
 0x150   : > { %v349_v40 = vor.u32 1.1754944e-38, %v348_v37  ;;  %vm347_vm5 = vcmp.eq.f32.partialorder %v346_v38, 8.507059e+37 }
 0x154   : > { %v603_v32 = vpop.eup %602 }
 0x155   : > { %v338_v33 = vmul.f32 %v603_v32, %v336_v31  ;;  %vm343_vm2 = vweird.f32 %v603_v32 }
 0x156   : > { %vm344_vm4 = vmor %vm342_vm3, %vm343_vm2 }
 0x157   : > { %v339_v34 = vsub.f32 1.0, %v338_v33 }
 0x159   : > { %v340_v35 = vmul.f32 %v603_v32, %v339_v34 }
 0x15b   : > { %v341_v36 = vadd.f32 %v603_v32, %v340_v35 }
 0x15d   : > { %v345_v39 = vsel %vm344_vm4, %v603_v32, %v341_v36 }
 0x15e   : > { %v350_v42 = vsel %vm347_vm5, %v349_v40, %v345_v39 }
 0x1bc   : > { %v355_v41 = vpop.permute.xlu1 %354 }
 0x1bd   : > { %v357_v43 = vmul.f32 %v355_v41, %v350_v42 }
 0x1bf   : > { %604 = vtanh.f32 %v357_v43 }
 0x1c5   : > { %v605_v44 = vpop.eup %604 }
 0x1c6   : > { %360 = vrot.lane.b32.xlu2 %v605_v44, %s744_s14 }
 0x220   : > { %v361_v45 = vpop.permute.xlu2 %360 }
 0x221   : > { %v363_v46 = vmul.f32 %v361_v45, %v350_v42 }
 0x223   : > { %v364_v47 = vmul.f32 20.0, %v363_v46 }
 0x225   : > { %v365_v48 = vmul.f32 1.442695, %v364_v47 }
 0x227   : > { %606 = vpow2.f32 %v365_v48 }
 0x22d   : > { %v607_v49 = vpop.eup %606 }
 0x22e   : > { %368 = vrot.lane.b32.xlu2 %v607_v49, %s744_s14 }
 0x288   : > { %v369_v50 = vpop.permute.xlu2 %368 }
 0x289   : > { %v371_v51 = vsel %vm210_vm0, %v369_v50, 0.0 }
 0x28a   : > { %372 = vadd.xlane.f32.xlu0 %v371_v51 }
 0x2fd   : > { %v373_v52 = vpop.xlane.xlu0 %372 }
 0x2fe   : > { %608 = vrcp.f32 %v373_v52 }
 0x304   : > { %v609_v53 = vpop.eup %608 }
 0x305   : > { %v375_v54 = vmul.f32 %v609_v53, %v373_v52 }
 0x307   : > { %v376_v55 = vsub.f32 2.0, %v375_v54 }
 0x309   : > { %v377_v56 = vmul.f32 %v609_v53, %v376_v55 }
 0x30b   : > { %v378_v57 = vmul.f32 %v607_v49, %v377_v56 }
 0x30d   : > { %385 = vrot.lane.b32.xlu2 %v378_v57, %s745_s16  ;;  %380 = vrot.lane.b32.xlu1 %v378_v57, %s744_s14 }
 0x315   : > { %392 = vrot.lane.b32.xlu1 %v378_v57, %s746_s20 }
 0x367   : > { %v386_v59 = vpop.permute.xlu2 %385 }
 0x37f   : > { %v381_v58 = vpop.permute.xlu1 %380 }
 0x380   : > { %384 = vst.msk [vmem:[%s203_s29] sm:$0x3] %vm383_vm6, %v381_v58 }
 0x381   : > { %389 = vst.msk [vmem:[%s203_s29 - $0x2] sm:$0xc] %vm388_vm7, %v386_v59 }
 0x382   : > { %391 = vst.msk [vmem:[%s203_s29 - $0x4] sm:$0x30] %vm390_vm8, %v378_v57 }
 0x387   : > { %v393_v60 = vpop.permute.xlu1 %392 }
 0x388   : > { %396 = vst.msk [vmem:[%s203_s29 - $0x6] sm:$0xc0] %vm395_vm9, %v393_v60 }
 0x389   : > { %697 = shalt.err (!%p694_p0)
}
 0x38a   : > { %546 = dma.vmem_to_hbm [thread:$0]  (%p812_p11), %s411_s19, 32, %s413_s24, %s398_s13  }
 0x38b PF: > { %s424_s27 = sand.u32 1, %s728_s9   ;;  %p976_p1 = scmp.ge.s32.totalorder %s740_s12, 2 }
 0x38c   : > { %s425_s28 = scalar_lea.sflag [#allocation5], %s424_s27 }
 0x38d   : > { %p556_p4 = pnand %p976_p1, %p816_p12 }
 0x38f   : > { %p557_p7 = pneg %p556_p4 }
 0x391   : > { %723 = dma.done.wait (%p557_p7), %s425_s28, 32  }
 0x392   : > { %725 = vsyncadd (%p557_p7), %s425_s28, 4294967264  ;;  %p18_p5 = scmp.ge.s32.totalorder %s787_s15, 4   ;;  %s977_s9 = smov %s732_s10 }
 0x393   : > { %s978_s10 = smov %s736_s11  ;;  %s979_s11 = smov %s799_s18 }
 0x394   : > { %s980_s12 = smov %s787_s15  ;;  %20 = sbr.rel (!%p18_p5) target bundleno = 7 (0x7), region = 89 }
 0x399   :  { %431 = vsyncpa [#allocation4], 1 }
 0x39a   :  { %433 = vsyncpa [#allocation4 + $0x1], 1 }
 0x39b   :  { %434 = vsyncpa [#allocation7], 1 }
 0x39c   :  { %436 = vsyncpa [#allocation7 + $0x1], 1 }
 0x39d   :  { %437 = vsyncpa [#allocation5], 1 }
 0x39e   :  { %439 = vsyncpa [#allocation5 + $0x1], 1 }

</bundles_post_ra>
